<compile_context>
chip_gen: v7x
topology: tpu7x:2x2x1
jax: 0.10.0
libtpu: 0.0.40
codegen_flags: <defaults>
</compile_context>

<pallas_src>
import functools

import jax
import jax.numpy as jnp
from jax.experimental import pallas as pl
from jax.experimental.pallas import tpu as pltpu

BN_EPS = 1e-5
_LANE = 128
_MAX_TILE_LANES = 8192          # review: 2048-8192 lane tiles to amortize per-step cost
_VMEM_BUDGET = 40 << 20         # conservative: headroom under v7x's 64 MiB physical VMEM


def _round_up(v, m):
    return (v + m - 1) // m * m


def _cdiv(a, b):
    return (a + b - 1) // b


def _fused_kernel(n_count, use_cache, mm_dtype,
                  x_ref, w_ref, b_ref, gamma_ref, beta_ref, o_ref,
                  sum_ref, sq_ref, scale_ref, shift_ref, cache_ref):
    """Grid: (branch, phase, hw_tile).

    x_ref:     (N, Ch, THW)   branch dim squeezed by BlockSpec (None entry)
    w_ref:     (OC, Ch)       1x1 conv weight
    b_ref:     (OC, 1)        conv bias
    gamma_ref: (Ch, 1)        BN affine scale
    beta_ref:  (Ch, 1)        BN affine shift
    o_ref:     (N, OC, THW)
    sum_ref/sq_ref:     (Ch, 128) lane-wide partial sums (VPU-only hot loop)
    scale_ref/shift_ref:(Ch, 1)  folded BN affine, computed once per branch
    cache_ref: (T*N, Ch, THW) VMEM copy of this branch's x (phase 1 reads it
               instead of re-streaming HBM); tiny dummy when use_cache=False.
    """
    phase = pl.program_id(1)
    t = pl.program_id(2)
    n_batch, _, thw = x_ref.shape
    groups = thw // _LANE

    @pl.when(jnp.logical_and(phase == 0, t == 0))
    def _():
        sum_ref[...] = jnp.zeros_like(sum_ref)
        sq_ref[...] = jnp.zeros_like(sq_ref)

    @pl.when(phase == 0)
    def _():
        # Pass 1: stream x once; per-channel sum / sum-of-squares over the full
        # (N, H*W) extent. Zero-padded lanes contribute nothing (divisor below
        # uses the true N*H*W), matching PyTorch training-mode BN exactly.
        x = x_ref[...]                                   # (N, Ch, THW)
        acc_s = sum_ref[...]
        acc_q = sq_ref[...]
        for n in range(n_batch):                          # static, unrolled
            for g in range(groups):                       # lane-aligned slices: pure VPU
                blk = x[n, :, g * _LANE:(g + 1) * _LANE]  # (Ch, 128)
                acc_s = acc_s + blk
                acc_q = acc_q + blk * blk
        sum_ref[...] = acc_s
        sq_ref[...] = acc_q
        if use_cache:
            start = pl.multiple_of(t * n_batch, n_batch)
            cache_ref[pl.ds(start, n_batch)] = x          # VMEM cache for phase 1
        # Keep the (index-pinned) output buffer deterministic: even if writeback
        # semantics changed, only zeros (later overwritten) could reach HBM.
        o_ref[...] = jnp.zeros_like(o_ref)

    @pl.when(jnp.logical_and(phase == 1, t == 0))
    def _():
        # Hoisted once per branch: mean/var/rsqrt and the folded BN affine.
        inv_n = 1.0 / float(n_count)
        mean = jnp.sum(sum_ref[...], axis=1, keepdims=True) * inv_n        # (Ch, 1)
        ex2 = jnp.sum(sq_ref[...], axis=1, keepdims=True) * inv_n
        var = jnp.maximum(ex2 - mean * mean, 0.0)    # clamp: f32 cancellation safety
        scale = gamma_ref[...] * jax.lax.rsqrt(var + BN_EPS)
        scale_ref[...] = scale
        shift_ref[...] = beta_ref[...] - mean * scale

    @pl.when(phase == 1)
    def _():
        if use_cache:
            start = pl.multiple_of(t * n_batch, n_batch)
            x = cache_ref[pl.ds(start, n_batch)]          # no second HBM read of x
        else:
            x = x_ref[...]                                # streamed two-pass fallback
        scale = scale_ref[...]                            # (Ch, 1)
        shift = shift_ref[...]
        w = w_ref[...].astype(mm_dtype)
        b = b_ref[...]
        for n in range(n_batch):                          # static, unrolled
            y = jnp.maximum(x[n] * scale + shift, 0.0)    # BN + ReLU, (Ch, THW)
            r = jnp.dot(w, y.astype(mm_dtype),
                        preferred_element_type=jnp.float32)   # 1x1 conv on the MXU
            o_ref[n] = (r + b).astype(o_ref.dtype)


@functools.partial(jax.jit, static_argnames=("force_streamed",))
def added_module_forward(x, params, force_streamed=False):
    """x: (N, C, H, W) float32 NCHW (as in PyTorch). Returns (y0, y1), NCHW."""
    N, C, H, W = x.shape
    Ch = C // 2
    OC = params["branch1"]["w"].shape[0]
    HW = H * W

    # (N, C, H, W) -> (N, 2, Ch, HW): contiguous split/merge -> no-copy reshape.
    x_r = x.reshape(N, 2, Ch, HW)

    # --- lane-tile sizing against an explicit VMEM budget (fits v7x 64 MiB) ---
    per_lane = 4 * 2 * (N * Ch + N * OC)     # double-buffered x + out block bytes / lane
    thw_cap = max(_LANE, min(_MAX_TILE_LANES,
                             ((_VMEM_BUDGET // 2) // per_lane) // _LANE * _LANE))
    HW128 = _round_up(HW, _LANE)
    T = _cdiv(HW128, thw_cap)
    THW = _round_up(_cdiv(HW128, T), _LANE)
    HW_pad = THW * T
    if HW_pad != HW:
        # Zero padding (copy only when H*W is not lane-aligned); padded columns
        # contribute nothing to the BN sums and are sliced off below.
        x_r = jnp.pad(x_r, ((0, 0), (0, 0), (0, 0), (0, HW_pad - HW)))

    x_block = N * Ch * THW * 4
    out_block = N * OC * THW * 4
    cache_bytes = N * Ch * HW_pad * 4
    use_cache = (not force_streamed) and (
        2 * (x_block + out_block) + cache_bytes + (1 << 20) <= _VMEM_BUDGET)

    def stack(name):
        return jnp.stack([params["branch1"][name], params["branch2"][name]], 0)

    w = stack("w")                          # (2, OC, Ch)
    b = stack("b").reshape(2, OC, 1)
    gamma = stack("gamma").reshape(2, Ch, 1)
    beta = stack("beta").reshape(2, Ch, 1)

    # bf16 MXU operands (f32 accumulation) only at production channel counts.
    mm_dtype = jnp.bfloat16 if (Ch >= 128 and OC >= 8) else jnp.float32

    if use_cache:
        # Phase 1 pins the x block index at its last phase-0 value -> Pallas issues
        # no further x DMAs; the kernel reads the VMEM cache instead.
        x_index = lambda bi, p, t: (0, bi, 0, t * (1 - p) + (T - 1) * p)
        cache_shape = (T * N, Ch, THW)
    else:
        x_index = lambda bi, p, t: (0, bi, 0, t)        # two-pass streaming fallback
        cache_shape = (8, _LANE)                        # unused dummy

    vmem_needed = (2 * (x_block + out_block)
                   + (cache_bytes if use_cache else 4096)
                   + 4 * Ch * _LANE * 4 + (2 << 20))
    vmem_limit = int(min(max(vmem_needed, 16 << 20), 48 << 20))

    flops = 2 * (2 * OC * Ch * N * HW + 8 * Ch * N * HW)
    bytes_accessed = (x_r.size * 4 * (1 if use_cache else 2)
                      + 2 * N * OC * HW_pad * 4
                      + (w.size + b.size + gamma.size + beta.size) * 4)

    out = pl.pallas_call(
        functools.partial(_fused_kernel, N * HW, use_cache, mm_dtype),
        out_shape=jax.ShapeDtypeStruct((2, N, OC, HW_pad), jnp.float32),
        grid_spec=pltpu.PrefetchScalarGridSpec(
            num_scalar_prefetch=0,
            grid=(2, 2, T),                               # (branch, phase, hw_tile)
            in_specs=[
                pl.BlockSpec((N, None, Ch, THW), x_index),
                pl.BlockSpec((None, OC, Ch), lambda bi, p, t: (bi, 0, 0)),
                pl.BlockSpec((None, OC, 1), lambda bi, p, t: (bi, 0, 0)),
                pl.BlockSpec((None, Ch, 1), lambda bi, p, t: (bi, 0, 0)),
                pl.BlockSpec((None, Ch, 1), lambda bi, p, t: (bi, 0, 0)),
            ],
            # Pinned at tile 0 during phase 0 (no writebacks, buffer is zeroed by
            # the kernel); phase 1 sweeps and writes every tile exactly once.
            out_specs=pl.BlockSpec((None, N, OC, THW),
                                   lambda bi, p, t: (bi, 0, 0, t * p)),
            scratch_shapes=[
                pltpu.VMEM((Ch, _LANE), jnp.float32),     # lane-wide sum
                pltpu.VMEM((Ch, _LANE), jnp.float32),     # lane-wide sum of squares
                pltpu.VMEM((Ch, 1), jnp.float32),         # folded BN scale
                pltpu.VMEM((Ch, 1), jnp.float32),         # folded BN shift
                pltpu.VMEM(cache_shape, jnp.float32),     # x cache (or dummy)
            ]),
        compiler_params=pltpu.CompilerParams(
            dimension_semantics=("parallel", "arbitrary", "arbitrary"),
            vmem_limit_bytes=vmem_limit),
        cost_estimate=pl.CostEstimate(
            flops=flops, transcendentals=2 * Ch, bytes_accessed=bytes_accessed),
    )(x_r, w, b, gamma, beta)

    if HW_pad != HW:
        out = out[..., :HW]
    # Leading-axis slice + reshape: no transpose on the output path.
    y0 = out[0].reshape(N, OC, H, W)
    y1 = out[1].reshape(N, OC, H, W)
    return y0, y1


def _reference_forward(x, params):
    """Pure-JAX reference mirroring the PyTorch forward (training-mode BN)."""
    N, C, H, W = x.shape
    Ch = C // 2

    def branch(x_half, p):
        mean = jnp.mean(x_half, axis=(0, 2, 3), keepdims=True)
        var = jnp.mean((x_half - mean) ** 2, axis=(0, 2, 3), keepdims=True)
        y = (x_half - mean) * jax.lax.rsqrt(var + BN_EPS)
        y = y * p["gamma"].reshape(1, Ch, 1, 1) + p["beta"].reshape(1, Ch, 1, 1)
        y = jnp.maximum(y, 0.0)
        out = jnp.einsum("nchw,oc->nohw", y, p["w"])
        return out + p["b"].reshape(1, -1, 1, 1)

    return (branch(x[:, :Ch], params["branch1"]),
            branch(x[:, Ch:2 * Ch], params["branch2"]))


def make_params(key, dimension):
    Ch = int(dimension / 2)
    OC = int(dimension / 3)

    def branch_params(k):
        kw, kb = jax.random.split(k)
        # Conv2d(Ch, OC, kernel_size=1) weight (OC, Ch, 1, 1) stored as (OC, Ch).
        w = jax.random.normal(kw, (OC, Ch), jnp.float32) * 0.1
        b = jax.random.normal(kb, (OC,), jnp.float32) * 0.1
        gamma = jnp.ones((Ch,), jnp.float32)    # BatchNorm2d default init
        beta = jnp.zeros((Ch,), jnp.float32)
        return {"w": w, "b": b, "gamma": gamma, "beta": beta}

    k1, k2 = jax.random.split(key)
    return {"branch1": branch_params(k1), "branch2": branch_params(k2)}


# TODO(synk): BatchNorm2d running-mean/var buffer updates (a training-time side
# effect) are not modeled; the returned forward values do not depend on them.

if __name__ == "__main__":
    root = jax.random.PRNGKey(0)
    kp, k1, k2, k3 = jax.random.split(root, 4)

    dimension = 12                      # each branch: BN(6) -> ReLU -> Conv 6->4
    params = make_params(kp, dimension)
    OC = int(dimension / 3)

    def check(xin, force_streamed=False):
        y0, y1 = added_module_forward(xin, params, force_streamed=force_streamed)
        jax.block_until_ready((y0, y1))
        r0, r1 = _reference_forward(xin, params)
        n, _, h, w = xin.shape
        assert y0.shape == (n, OC, h, w) and y1.shape == (n, OC, h, w)
        assert jnp.allclose(y0, r0, atol=1e-4, rtol=1e-4)
        assert jnp.allclose(y1, r1, atol=1e-4, rtol=1e-4)

    # Primary small shape (single tile, x cached in VMEM).
    check(jax.random.normal(k1, (2, dimension, 16, 16), jnp.float32))
    # H*W not a multiple of 128 -> exercises lane padding.
    check(jax.random.normal(k2, (2, dimension, 10, 10), jnp.float32))
    # H*W > max tile -> multi-tile statistics + pinned-index VMEM cache,
    # plus the streamed two-pass fallback.
    x_big = jax.random.normal(k3, (2, dimension, 96, 96), jnp.float32)
    check(x_big)
    check(x_big, force_streamed=True)

    print("KERNEL_OK")
</pallas_src>

<mosaic_0001>
module attributes {stable_mosaic.version = 11 : i64} {
  func.func @_fused_kernel(%arg0: i32, %arg1: i32, %arg2: i32, %arg3: memref<2x1x6x256xf32, #tpu.memory_space<vmem>>, %arg4: memref<1x4x6xf32, #tpu.memory_space<vmem>>, %arg5: memref<1x4x1xf32, #tpu.memory_space<vmem>>, %arg6: memref<1x6x1xf32, #tpu.memory_space<vmem>>, %arg7: memref<1x6x1xf32, #tpu.memory_space<vmem>>, %arg8: memref<1x2x4x256xf32, #tpu.memory_space<vmem>>, %arg9: memref<6x128xf32, #tpu.memory_space<vmem>>, %arg10: memref<6x128xf32, #tpu.memory_space<vmem>>, %arg11: memref<6x1xf32, #tpu.memory_space<vmem>>, %arg12: memref<6x1xf32, #tpu.memory_space<vmem>>, %arg13: memref<2x6x256xf32, #tpu.memory_space<vmem>>) attributes {dimension_semantics = [#tpu.dimension_semantics<parallel>, #tpu.dimension_semantics<arbitrary>, #tpu.dimension_semantics<arbitrary>], iteration_bounds = array<i64: 2, 2, 1>, scalar_prefetch = 0 : i64, scratch_operands = 5 : i64, tpu.core_type = #tpu.core_type<tc>, window_params = [{transform_indices = @transform_0, window_bounds = array<i64: 2, 1, 6, 256>}, {transform_indices = @transform_1, window_bounds = array<i64: 1, 4, 6>}, {transform_indices = @transform_2, window_bounds = array<i64: 1, 4, 1>}, {transform_indices = @transform_3, window_bounds = array<i64: 1, 6, 1>}, {transform_indices = @transform_4, window_bounds = array<i64: 1, 6, 1>}, {transform_indices = @transform_5, window_bounds = array<i64: 1, 2, 4, 256>}]} {
    %c0_i32 = arith.constant 0 : i32
    %0 = arith.cmpi eq, %arg1, %c0_i32 : i32
    %c0_i32_0 = arith.constant 0 : i32
    %1 = arith.cmpi eq, %arg2, %c0_i32_0 : i32
    %2 = arith.andi %0, %1 : i1
    %3 = arith.extui %2 : i1 to i32
    %c0_i32_1 = arith.constant 0 : i32
    %4 = arith.cmpi ne, %3, %c0_i32_1 : i32
    scf.if %4 {
      %cst = arith.constant 0.000000e+00 : f32
      %16 = vector.broadcast %cst : f32 to vector<6x128xf32>
      %c0 = arith.constant 0 : index
      %c0_8 = arith.constant 0 : index
      %17 = vector.load %arg9[%c0, %c0_8] : memref<6x128xf32, #tpu.memory_space<vmem>>, vector<6x128xf32>
      tpu.vector_store %arg9[%c0, %c0_8], %16 {strides = array<i32>} : memref<6x128xf32, #tpu.memory_space<vmem>>, vector<6x128xf32>,
      %cst_9 = arith.constant 0.000000e+00 : f32
      %18 = vector.broadcast %cst_9 : f32 to vector<6x128xf32>
      %c0_10 = arith.constant 0 : index
      %c0_11 = arith.constant 0 : index
      %19 = vector.load %arg10[%c0_10, %c0_11] : memref<6x128xf32, #tpu.memory_space<vmem>>, vector<6x128xf32>
      tpu.vector_store %arg10[%c0_10, %c0_11], %18 {strides = array<i32>} : memref<6x128xf32, #tpu.memory_space<vmem>>, vector<6x128xf32>,
    } else {
    }
    %c0_i32_2 = arith.constant 0 : i32
    %5 = arith.cmpi eq, %arg1, %c0_i32_2 : i32
    %6 = arith.extui %5 : i1 to i32
    %c0_i32_3 = arith.constant 0 : i32
    %7 = arith.cmpi ne, %6, %c0_i32_3 : i32
    scf.if %7 {
      %c0 = arith.constant 0 : index
      %c0_8 = arith.constant 0 : index
      %c0_9 = arith.constant 0 : index
      %c0_10 = arith.constant 0 : index
      %16 = vector.load %arg3[%c0, %c0_8, %c0_9, %c0_10] : memref<2x1x6x256xf32, #tpu.memory_space<vmem>>, vector<2x1x6x256xf32>
      %17 = vector.shape_cast %16 : vector<2x1x6x256xf32> to vector<2x6x256xf32>
      %c0_11 = arith.constant 0 : index
      %c0_12 = arith.constant 0 : index
      %18 = vector.load %arg9[%c0_11, %c0_12] : memref<6x128xf32, #tpu.memory_space<vmem>>, vector<6x128xf32>
      %c0_13 = arith.constant 0 : index
      %c0_14 = arith.constant 0 : index
      %19 = vector.load %arg10[%c0_13, %c0_14] : memref<6x128xf32, #tpu.memory_space<vmem>>, vector<6x128xf32>
      %20 = vector.extract_strided_slice %17 {offsets = [0, 0, 0], sizes = [1, 6, 128], strides = [1, 1, 1]} : vector<2x6x256xf32> to vector<1x6x128xf32>
      %21 = vector.shape_cast %20 : vector<1x6x128xf32> to vector<6x128xf32>
      %22 = arith.addf %18, %21 : vector<6x128xf32>
      %23 = arith.mulf %21, %21 : vector<6x128xf32>
      %24 = arith.addf %19, %23 : vector<6x128xf32>
      %25 = vector.extract_strided_slice %17 {offsets = [0, 0, 128], sizes = [1, 6, 128], strides = [1, 1, 1]} : vector<2x6x256xf32> to vector<1x6x128xf32>
      %26 = vector.shape_cast %25 : vector<1x6x128xf32> to vector<6x128xf32>
      %27 = arith.addf %22, %26 : vector<6x128xf32>
      %28 = arith.mulf %26, %26 : vector<6x128xf32>
      %29 = arith.addf %24, %28 : vector<6x128xf32>
      %30 = vector.extract_strided_slice %17 {offsets = [1, 0, 0], sizes = [1, 6, 128], strides = [1, 1, 1]} : vector<2x6x256xf32> to vector<1x6x128xf32>
      %31 = vector.shape_cast %30 : vector<1x6x128xf32> to vector<6x128xf32>
      %32 = arith.addf %27, %31 : vector<6x128xf32>
      %33 = arith.mulf %31, %31 : vector<6x128xf32>
      %34 = arith.addf %29, %33 : vector<6x128xf32>
      %35 = vector.extract_strided_slice %17 {offsets = [1, 0, 128], sizes = [1, 6, 128], strides = [1, 1, 1]} : vector<2x6x256xf32> to vector<1x6x128xf32>
      %36 = vector.shape_cast %35 : vector<1x6x128xf32> to vector<6x128xf32>
      %37 = arith.addf %32, %36 : vector<6x128xf32>
      %38 = arith.mulf %36, %36 : vector<6x128xf32>
      %39 = arith.addf %34, %38 : vector<6x128xf32>
      %c0_15 = arith.constant 0 : index
      %c0_16 = arith.constant 0 : index
      %40 = vector.load %arg9[%c0_15, %c0_16] : memref<6x128xf32, #tpu.memory_space<vmem>>, vector<6x128xf32>
      tpu.vector_store %arg9[%c0_15, %c0_16], %37 {strides = array<i32>} : memref<6x128xf32, #tpu.memory_space<vmem>>, vector<6x128xf32>,
      %c0_17 = arith.constant 0 : index
      %c0_18 = arith.constant 0 : index
      %41 = vector.load %arg10[%c0_17, %c0_18] : memref<6x128xf32, #tpu.memory_space<vmem>>, vector<6x128xf32>
      tpu.vector_store %arg10[%c0_17, %c0_18], %39 {strides = array<i32>} : memref<6x128xf32, #tpu.memory_space<vmem>>, vector<6x128xf32>,
      %c2_i32 = arith.constant 2 : i32
      %42 = arith.muli %arg2, %c2_i32 : i32
      %43 = tpu.assume_multiple %42, 2 : i32
      %44 = arith.index_cast %43 : i32 to index
      %c0_19 = arith.constant 0 : index
      %c0_20 = arith.constant 0 : index
      %45 = vector.load %arg13[%44, %c0_19, %c0_20] : memref<2x6x256xf32, #tpu.memory_space<vmem>>, vector<2x6x256xf32>
      tpu.vector_store %arg13[%44, %c0_19, %c0_20], %17 {strides = array<i32>} : memref<2x6x256xf32, #tpu.memory_space<vmem>>, vector<2x6x256xf32>,
      %cst = arith.constant 0.000000e+00 : f32
      %46 = vector.broadcast %cst : f32 to vector<2x4x256xf32>
      %c0_21 = arith.constant 0 : index
      %c0_22 = arith.constant 0 : index
      %c0_23 = arith.constant 0 : index
      %c0_24 = arith.constant 0 : index
      %47 = vector.load %arg8[%c0_21, %c0_22, %c0_23, %c0_24] : memref<1x2x4x256xf32, #tpu.memory_space<vmem>>, vector<1x2x4x256xf32>
      %48 = vector.shape_cast %47 : vector<1x2x4x256xf32> to vector<2x4x256xf32>
      %49 = vector.shape_cast %46 : vector<2x4x256xf32> to vector<1x2x4x256xf32>
      tpu.vector_store %arg8[%c0_21, %c0_22, %c0_23, %c0_24], %49 {strides = array<i32>} : memref<1x2x4x256xf32, #tpu.memory_space<vmem>>, vector<1x2x4x256xf32>,
    } else {
    }
    %c1_i32 = arith.constant 1 : i32
    %8 = arith.cmpi eq, %arg1, %c1_i32 : i32
    %c0_i32_4 = arith.constant 0 : i32
    %9 = arith.cmpi eq, %arg2, %c0_i32_4 : i32
    %10 = arith.andi %8, %9 : i1
    %11 = arith.extui %10 : i1 to i32
    %c0_i32_5 = arith.constant 0 : i32
    %12 = arith.cmpi ne, %11, %c0_i32_5 : i32
    scf.if %12 {
      %c0 = arith.constant 0 : index
      %c0_8 = arith.constant 0 : index
      %16 = vector.load %arg9[%c0, %c0_8] : memref<6x128xf32, #tpu.memory_space<vmem>>, vector<6x128xf32>
      %cst = arith.constant dense<0.000000e+00> : vector<6xf32>
      %17 = vector.multi_reduction <add>, %16, %cst [1] : vector<6x128xf32> to vector<6xf32>
      %18 = vector.shape_cast %17 : vector<6xf32> to vector<6x1xf32>
      %cst_9 = arith.constant 0.001953125 : f32
      %19 = vector.broadcast %cst_9 : f32 to vector<6x1xf32>
      %20 = arith.mulf %18, %19 : vector<6x1xf32>
      %c0_10 = arith.constant 0 : index
      %c0_11 = arith.constant 0 : index
      %21 = vector.load %arg10[%c0_10, %c0_11] : memref<6x128xf32, #tpu.memory_space<vmem>>, vector<6x128xf32>
      %cst_12 = arith.constant dense<0.000000e+00> : vector<6xf32>
      %22 = vector.multi_reduction <add>, %21, %cst_12 [1] : vector<6x128xf32> to vector<6xf32>
      %23 = vector.shape_cast %22 : vector<6xf32> to vector<6x1xf32>
      %cst_13 = arith.constant 0.001953125 : f32
      %24 = vector.broadcast %cst_13 : f32 to vector<6x1xf32>
      %25 = arith.mulf %23, %24 : vector<6x1xf32>
      %26 = arith.mulf %20, %20 : vector<6x1xf32>
      %27 = arith.subf %25, %26 : vector<6x1xf32>
      %cst_14 = arith.constant 0.000000e+00 : f32
      %28 = vector.broadcast %cst_14 : f32 to vector<6x1xf32>
      %29 = arith.maximumf %27, %28 : vector<6x1xf32>
      %c0_15 = arith.constant 0 : index
      %c0_16 = arith.constant 0 : index
      %c0_17 = arith.constant 0 : index
      %30 = vector.load %arg6[%c0_15, %c0_16, %c0_17] : memref<1x6x1xf32, #tpu.memory_space<vmem>>, vector<1x6x1xf32>
      %31 = vector.shape_cast %30 : vector<1x6x1xf32> to vector<6x1xf32>
      %cst_18 = arith.constant 9.99999974E-6 : f32
      %32 = vector.broadcast %cst_18 : f32 to vector<6x1xf32>
      %33 = arith.addf %29, %32 : vector<6x1xf32>
      %34 = math.rsqrt %33 : vector<6x1xf32>
      %35 = arith.mulf %31, %34 : vector<6x1xf32>
      %c0_19 = arith.constant 0 : index
      %c0_20 = arith.constant 0 : index
      %36 = vector.load %arg11[%c0_19, %c0_20] : memref<6x1xf32, #tpu.memory_space<vmem>>, vector<6x1xf32>
      tpu.vector_store %arg11[%c0_19, %c0_20], %35 {strides = array<i32>} : memref<6x1xf32, #tpu.memory_space<vmem>>, vector<6x1xf32>,
      %c0_21 = arith.constant 0 : index
      %c0_22 = arith.constant 0 : index
      %c0_23 = arith.constant 0 : index
      %37 = vector.load %arg7[%c0_21, %c0_22, %c0_23] : memref<1x6x1xf32, #tpu.memory_space<vmem>>, vector<1x6x1xf32>
      %38 = vector.shape_cast %37 : vector<1x6x1xf32> to vector<6x1xf32>
      %39 = arith.mulf %20, %35 : vector<6x1xf32>
      %40 = arith.subf %38, %39 : vector<6x1xf32>
      %c0_24 = arith.constant 0 : index
      %c0_25 = arith.constant 0 : index
      %41 = vector.load %arg12[%c0_24, %c0_25] : memref<6x1xf32, #tpu.memory_space<vmem>>, vector<6x1xf32>
      tpu.vector_store %arg12[%c0_24, %c0_25], %40 {strides = array<i32>} : memref<6x1xf32, #tpu.memory_space<vmem>>, vector<6x1xf32>,
    } else {
    }
    %c1_i32_6 = arith.constant 1 : i32
    %13 = arith.cmpi eq, %arg1, %c1_i32_6 : i32
    %14 = arith.extui %13 : i1 to i32
    %c0_i32_7 = arith.constant 0 : i32
    %15 = arith.cmpi ne, %14, %c0_i32_7 : i32
    scf.if %15 {
      %c2_i32 = arith.constant 2 : i32
      %16 = arith.muli %arg2, %c2_i32 : i32
      %17 = tpu.assume_multiple %16, 2 : i32
      %18 = arith.index_cast %17 : i32 to index
      %c0 = arith.constant 0 : index
      %c0_8 = arith.constant 0 : index
      %19 = vector.load %arg13[%18, %c0, %c0_8] : memref<2x6x256xf32, #tpu.memory_space<vmem>>, vector<2x6x256xf32>
      %c0_9 = arith.constant 0 : index
      %c0_10 = arith.constant 0 : index
      %20 = vector.load %arg11[%c0_9, %c0_10] : memref<6x1xf32, #tpu.memory_space<vmem>>, vector<6x1xf32>
      %c0_11 = arith.constant 0 : index
      %c0_12 = arith.constant 0 : index
      %21 = vector.load %arg12[%c0_11, %c0_12] : memref<6x1xf32, #tpu.memory_space<vmem>>, vector<6x1xf32>
      %c0_13 = arith.constant 0 : index
      %c0_14 = arith.constant 0 : index
      %c0_15 = arith.constant 0 : index
      %22 = vector.load %arg4[%c0_13, %c0_14, %c0_15] : memref<1x4x6xf32, #tpu.memory_space<vmem>>, vector<1x4x6xf32>
      %23 = vector.shape_cast %22 : vector<1x4x6xf32> to vector<4x6xf32>
      %c0_16 = arith.constant 0 : index
      %c0_17 = arith.constant 0 : index
      %c0_18 = arith.constant 0 : index
      %24 = vector.load %arg5[%c0_16, %c0_17, %c0_18] : memref<1x4x1xf32, #tpu.memory_space<vmem>>, vector<1x4x1xf32>
      %25 = vector.shape_cast %24 : vector<1x4x1xf32> to vector<4x1xf32>
      %26 = vector.extract_strided_slice %19 {offsets = [0, 0, 0], sizes = [1, 6, 256], strides = [1, 1, 1]} : vector<2x6x256xf32> to vector<1x6x256xf32>
      %27 = vector.shape_cast %26 : vector<1x6x256xf32> to vector<6x256xf32>
      %28 = vector.broadcast %20 : vector<6x1xf32> to vector<6x256xf32>
      %29 = arith.mulf %27, %28 : vector<6x256xf32>
      %30 = vector.broadcast %21 : vector<6x1xf32> to vector<6x256xf32>
      %31 = arith.addf %29, %30 : vector<6x256xf32>
      %cst = arith.constant 0.000000e+00 : f32
      %32 = vector.broadcast %cst : f32 to vector<6x256xf32>
      %33 = arith.maximumf %31, %32 : vector<6x256xf32>
      %cst_19 = arith.constant dense<0.000000e+00> : vector<4x256xf32>
      %34 = tpu.matmul %23, %33, %cst_19 {dimension_numbers = #tpu.dot_dimension_numbers<[1], [0], [0], [1], [0, 0, 1, 1], [], []>} : vector<4x6xf32>, vector<6x256xf32>, vector<4x256xf32> -> vector<4x256xf32>
      %35 = vector.broadcast %25 : vector<4x1xf32> to vector<4x256xf32>
      %36 = arith.addf %34, %35 : vector<4x256xf32>
      %c0_20 = arith.constant 0 : index
      %c0_21 = arith.constant 0 : index
      %c0_22 = arith.constant 0 : index
      %c0_23 = arith.constant 0 : index
      %37 = vector.load %arg8[%c0_20, %c0_21, %c0_22, %c0_23] : memref<1x2x4x256xf32, #tpu.memory_space<vmem>>, vector<1x1x4x256xf32>
      %38 = vector.shape_cast %37 : vector<1x1x4x256xf32> to vector<4x256xf32>
      %39 = vector.shape_cast %36 : vector<4x256xf32> to vector<1x1x4x256xf32>
      tpu.vector_store %arg8[%c0_20, %c0_21, %c0_22, %c0_23], %39 {strides = array<i32>} : memref<1x2x4x256xf32, #tpu.memory_space<vmem>>, vector<1x1x4x256xf32>,
      %40 = vector.extract_strided_slice %19 {offsets = [1, 0, 0], sizes = [1, 6, 256], strides = [1, 1, 1]} : vector<2x6x256xf32> to vector<1x6x256xf32>
      %41 = vector.shape_cast %40 : vector<1x6x256xf32> to vector<6x256xf32>
      %42 = vector.broadcast %20 : vector<6x1xf32> to vector<6x256xf32>
      %43 = arith.mulf %41, %42 : vector<6x256xf32>
      %44 = vector.broadcast %21 : vector<6x1xf32> to vector<6x256xf32>
      %45 = arith.addf %43, %44 : vector<6x256xf32>
      %cst_24 = arith.constant 0.000000e+00 : f32
      %46 = vector.broadcast %cst_24 : f32 to vector<6x256xf32>
      %47 = arith.maximumf %45, %46 : vector<6x256xf32>
      %cst_25 = arith.constant dense<0.000000e+00> : vector<4x256xf32>
      %48 = tpu.matmul %23, %47, %cst_25 {dimension_numbers = #tpu.dot_dimension_numbers<[1], [0], [0], [1], [0, 0, 1, 1], [], []>} : vector<4x6xf32>, vector<6x256xf32>, vector<4x256xf32> -> vector<4x256xf32>
      %49 = vector.broadcast %25 : vector<4x1xf32> to vector<4x256xf32>
      %50 = arith.addf %48, %49 : vector<4x256xf32>
      %c0_26 = arith.constant 0 : index
      %c1 = arith.constant 1 : index
      %c0_27 = arith.constant 0 : index
      %c0_28 = arith.constant 0 : index
      %51 = vector.load %arg8[%c0_26, %c1, %c0_27, %c0_28] : memref<1x2x4x256xf32, #tpu.memory_space<vmem>>, vector<1x1x4x256xf32>
      %52 = vector.shape_cast %51 : vector<1x1x4x256xf32> to vector<4x256xf32>
      %53 = vector.shape_cast %50 : vector<4x256xf32> to vector<1x1x4x256xf32>
      tpu.vector_store %arg8[%c0_26, %c1, %c0_27, %c0_28], %53 {strides = array<i32>} : memref<1x2x4x256xf32, #tpu.memory_space<vmem>>, vector<1x1x4x256xf32>,
    } else {
    }
    return
  }
  func.func @transform_0(%arg0: i32, %arg1: i32, %arg2: i32) -> (i32, i32, i32, i32) {
    %c1_i32 = arith.constant 1 : i32
    %0 = arith.subi %c1_i32, %arg1 : i32
    %1 = arith.muli %arg2, %0 : i32
    %c0_i32 = arith.constant 0 : i32
    %2 = arith.muli %c0_i32, %arg1 : i32
    %3 = arith.addi %1, %2 : i32
    %c0_i32_0 = arith.constant 0 : i32
    %c0_i32_1 = arith.constant 0 : i32
    %c0_i32_2 = arith.constant 0 : i32
    return %c0_i32_0, %arg0, %c0_i32_1, %3 : i32, i32, i32, i32
  }
  func.func @transform_1(%arg0: i32, %arg1: i32, %arg2: i32) -> (i32, i32, i32) {
    %c0_i32 = arith.constant 0 : i32
    %c0_i32_0 = arith.constant 0 : i32
    %c0_i32_1 = arith.constant 0 : i32
    return %arg0, %c0_i32, %c0_i32_0 : i32, i32, i32
  }
  func.func @transform_2(%arg0: i32, %arg1: i32, %arg2: i32) -> (i32, i32, i32) {
    %c0_i32 = arith.constant 0 : i32
    %c0_i32_0 = arith.constant 0 : i32
    %c0_i32_1 = arith.constant 0 : i32
    return %arg0, %c0_i32, %c0_i32_0 : i32, i32, i32
  }
  func.func @transform_3(%arg0: i32, %arg1: i32, %arg2: i32) -> (i32, i32, i32) {
    %c0_i32 = arith.constant 0 : i32
    %c0_i32_0 = arith.constant 0 : i32
    %c0_i32_1 = arith.constant 0 : i32
    return %arg0, %c0_i32, %c0_i32_0 : i32, i32, i32
  }
  func.func @transform_4(%arg0: i32, %arg1: i32, %arg2: i32) -> (i32, i32, i32) {
    %c0_i32 = arith.constant 0 : i32
    %c0_i32_0 = arith.constant 0 : i32
    %c0_i32_1 = arith.constant 0 : i32
    return %arg0, %c0_i32, %c0_i32_0 : i32, i32, i32
  }
  func.func @transform_5(%arg0: i32, %arg1: i32, %arg2: i32) -> (i32, i32, i32, i32) {
    %0 = arith.muli %arg2, %arg1 : i32
    %c0_i32 = arith.constant 0 : i32
    %c0_i32_0 = arith.constant 0 : i32
    %c0_i32_1 = arith.constant 0 : i32
    return %arg0, %c0_i32, %c0_i32_0, %0 : i32, i32, i32, i32
  }
}

</mosaic_0001>

<bundles_post_ra>
// kernel: squeeze.3
= control target key start
LH: loop header
LB: loop body
LE: loop exit
PB: predicated region body
PF: predicated region fallthrough
CT: control target
= control target key end

     0   :  { %s290_s0 = inlined_call_operand.vmem [shape: f32[1,2,4,256], index: 0, kind: input, shape index: {}]   ;;  %s291_s1 = inlined_call_operand.hbm [shape: f32[2,4,16,16], index: 1, kind: output, shape index: {}]  }
   0x1   :  { %v179_v0 = vld [vmem:[%s290_s0 + $0x4] sm:$0xf]  ;;  %v19_v1 = vld [vmem:[%s290_s0] sm:$0xf]  ;;  %v177_v2 = vld [vmem:[%s290_s0 + $0xc] sm:$0xf] }
   0x2   :  { %18 = vst [vmem:[#allocation2 + $0x8] sm:$0xf] %v179_v0  ;;  %20 = vst [vmem:[#allocation2] sm:$0xf] %v19_v1  ;;  %v178_v3 = vld [vmem:[%s290_s0 + $0x8] sm:$0xf] }
   0x3   :  { %9 = vst [vmem:[#allocation2 + $0x18] sm:$0xf] %v177_v2  ;;  %14 = vst [vmem:[#allocation2 + $0x10] sm:$0xf] %v178_v3 }
   0x4   :  { %2 = vsyncpa [#allocation1], 0  ;;  %vm22_vm0 = vcmask 130048   ;;  %s212_s0 = smov 96   ;;  %s213_s14 = smov 112  }
   0x5   :  { %s214_s15 = smov 80   ;;  %s215_s16 = smov 64  }
   0x6   :  { %s216_s17 = smov 48   ;;  %s217_s18 = smov 32  }
   0x7   :  { %s218_s19 = smov 16   ;;  %s219_s20 = smov [#allocation0]  }
   0x8   :  { %s169_s21 = sshll.u32 %s219_s20, 4  ;;  %s170_s21 = int_to_ptr.vmem [resolvable:$true] %s169_s21 }
   0x9   :  { %v63_v4 = vld.sshfl [vmem:[#allocation2] sm:$0xff pattern:$0xb3a29180]   ;;  %s188_s22 = scalar_lea.vmem %s170_s21, 2048  ;;  %p193_p1 = scmp.lt.s32.totalorder %s170_s21, %s170_s21 }
   0xa   :  { %v21_v5 = vld [vmem:[#allocation2] sm:$0xf]   ;;  %64 = vrot.lane.b32.xlu1 %v63_v4, %s212_s0  ;;  %47 = vrot.lane.b32.xlu0 %v63_v4, %s213_s14  ;;  %v26_v6 = vld [vmem:[#allocation2 + $0x8] sm:$0xf]   ;;  %v33_v8 = vld [vmem:[#allocation2 + $0x10] sm:$0xf]   ;;  %p189_p0 = scmp.ne.s32.totalorder %s170_s21, %s188_s22  ;;  %p194_p2 = scmp.lt.s32.totalorder %s188_s22, %s188_s22 }
   0xb   :  { %23 = vst.msk [vmem:[#allocation0] ss:$16 sm:$0x3] %vm22_vm0, %v21_v5   ;;  %24 = vst.msk [vmem:[#allocation0] ss:$16 sm:$0xc] %vm22_vm0, %v21_v5  }
   0xc   :  { %v72_v7 = vld.sshfl [vmem:[#allocation2 + $0x10] sm:$0xff pattern:$0xb3a29180]   ;;  %29 = vst.msk [vmem:[#allocation0 + $0x8] ss:$16 sm:$0x3] %vm22_vm0, %v26_v6   ;;  %p195_p3 = por %p194_p2, %p193_p1 }
   0xd   :  { %31 = vst.msk [vmem:[#allocation0 + $0x8] ss:$16 sm:$0xc] %vm22_vm0, %v26_v6   ;;  %v40_v9 = vld [vmem:[#allocation2 + $0x18] sm:$0xf]  }
   0xe   :  { %36 = vst.msk [vmem:[#allocation0 + $0x40] ss:$16 sm:$0x3] %vm22_vm0, %v33_v8   ;;  %38 = vst.msk [vmem:[#allocation0 + $0x40] ss:$16 sm:$0xc] %vm22_vm0, %v33_v8   ;;  %73 = vrot.lane.b32.xlu1 %v72_v7, %s212_s0  ;;  %56 = vrot.lane.b32.xlu0 %v72_v7, %s213_s14  ;;  %p196_p4 = pnand %p195_p3, %p189_p0 }
   0xf   :  { %43 = vst.msk [vmem:[#allocation0 + $0x48] ss:$16 sm:$0x3] %vm22_vm0, %v40_v9   ;;  %45 = vst.msk [vmem:[#allocation0 + $0x48] ss:$16 sm:$0xc] %vm22_vm0, %v40_v9  }
  0x12   :  { %90 = vrot.lane.b32.xlu1 %v72_v7, %s214_s15  ;;  %81 = vrot.lane.b32.xlu0 %v63_v4, %s214_s15 }
  0x16   :  { %107 = vrot.lane.b32.xlu1 %v72_v7, %s215_s16  ;;  %98 = vrot.lane.b32.xlu0 %v63_v4, %s215_s16 }
  0x1a   :  { %124 = vrot.lane.b32.xlu1 %v72_v7, %s216_s17  ;;  %115 = vrot.lane.b32.xlu0 %v63_v4, %s216_s17 }
  0x1e   :  { %141 = vrot.lane.b32.xlu1 %v72_v7, %s217_s18  ;;  %132 = vrot.lane.b32.xlu0 %v63_v4, %s217_s18 }
  0x22   :  { %158 = vrot.lane.b32.xlu1 %v72_v7, %s218_s19  ;;  %149 = vrot.lane.b32.xlu0 %v63_v4, %s218_s19 }
  0x7c   :  { %v65_v10 = vpop.permute.xlu1 %64   ;;  %v48_v11 = vpop.permute.xlu0 %47  }
  0x7d   :  { %68 = vst.msk [vmem:[#allocation0 + $0x2] ss:$8 sm:$0xf] %vm22_vm0, %v65_v10   ;;  %70 = vst.msk [vmem:[#allocation0 + $0x2] ss:$8 sm:$0xf0] %vm22_vm0, %v65_v10  }
  0x7e   :  { %51 = vst.msk [vmem:[#allocation0 + $0x1] ss:$8 sm:$0xf] %vm22_vm0, %v48_v11   ;;  %53 = vst.msk [vmem:[#allocation0 + $0x1] ss:$8 sm:$0xf0] %vm22_vm0, %v48_v11  }
  0x80   :  { %v74_v12 = vpop.permute.xlu1 %73   ;;  %v57_v13 = vpop.permute.xlu0 %56  }
  0x81   :  { %77 = vst.msk [vmem:[#allocation0 + $0x42] ss:$8 sm:$0xf] %vm22_vm0, %v74_v12   ;;  %79 = vst.msk [vmem:[#allocation0 + $0x42] ss:$8 sm:$0xf0] %vm22_vm0, %v74_v12  }
  0x82   :  { %60 = vst.msk [vmem:[#allocation0 + $0x41] ss:$8 sm:$0xf] %vm22_vm0, %v57_v13   ;;  %62 = vst.msk [vmem:[#allocation0 + $0x41] ss:$8 sm:$0xf0] %vm22_vm0, %v57_v13  }
  0x84   :  { %v91_v14 = vpop.permute.xlu1 %90   ;;  %v82_v15 = vpop.permute.xlu0 %81  }
  0x85   :  { %94 = vst.msk [vmem:[#allocation0 + $0x43] ss:$8 sm:$0xf] %vm22_vm0, %v91_v14   ;;  %96 = vst.msk [vmem:[#allocation0 + $0x43] ss:$8 sm:$0xf0] %vm22_vm0, %v91_v14  }
  0x86   :  { %85 = vst.msk [vmem:[#allocation0 + $0x3] ss:$8 sm:$0xf] %vm22_vm0, %v82_v15   ;;  %87 = vst.msk [vmem:[#allocation0 + $0x3] ss:$8 sm:$0xf0] %vm22_vm0, %v82_v15  }
  0x88   :  { %v108_v16 = vpop.permute.xlu1 %107   ;;  %v99_v17 = vpop.permute.xlu0 %98  }
  0x89   :  { %111 = vst.msk [vmem:[#allocation0 + $0x44] ss:$8 sm:$0xf] %vm22_vm0, %v108_v16   ;;  %113 = vst.msk [vmem:[#allocation0 + $0x44] ss:$8 sm:$0xf0] %vm22_vm0, %v108_v16  }
  0x8a   :  { %102 = vst.msk [vmem:[#allocation0 + $0x4] ss:$8 sm:$0xf] %vm22_vm0, %v99_v17   ;;  %104 = vst.msk [vmem:[#allocation0 + $0x4] ss:$8 sm:$0xf0] %vm22_vm0, %v99_v17  }
  0x8c   :  { %v125_v18 = vpop.permute.xlu1 %124   ;;  %v116_v19 = vpop.permute.xlu0 %115  }
  0x8d   :  { %128 = vst.msk [vmem:[#allocation0 + $0x45] ss:$8 sm:$0xf] %vm22_vm0, %v125_v18   ;;  %130 = vst.msk [vmem:[#allocation0 + $0x45] ss:$8 sm:$0xf0] %vm22_vm0, %v125_v18  }
  0x8e   :  { %119 = vst.msk [vmem:[#allocation0 + $0x5] ss:$8 sm:$0xf] %vm22_vm0, %v116_v19   ;;  %121 = vst.msk [vmem:[#allocation0 + $0x5] ss:$8 sm:$0xf0] %vm22_vm0, %v116_v19  }
  0x90   :  { %v142_v20 = vpop.permute.xlu1 %141   ;;  %v133_v21 = vpop.permute.xlu0 %132  }
  0x91   :  { %145 = vst.msk [vmem:[#allocation0 + $0x46] ss:$8 sm:$0xf] %vm22_vm0, %v142_v20   ;;  %147 = vst.msk [vmem:[#allocation0 + $0x46] ss:$8 sm:$0xf0] %vm22_vm0, %v142_v20  }
  0x92   :  { %136 = vst.msk [vmem:[#allocation0 + $0x6] ss:$8 sm:$0xf] %vm22_vm0, %v133_v21   ;;  %138 = vst.msk [vmem:[#allocation0 + $0x6] ss:$8 sm:$0xf0] %vm22_vm0, %v133_v21  }
  0x94   :  { %v159_v22 = vpop.permute.xlu1 %158   ;;  %v150_v23 = vpop.permute.xlu0 %149  }
  0x95   :  { %162 = vst.msk [vmem:[#allocation0 + $0x47] ss:$8 sm:$0xf] %vm22_vm0, %v159_v22   ;;  %164 = vst.msk [vmem:[#allocation0 + $0x47] ss:$8 sm:$0xf0] %vm22_vm0, %v159_v22  }
  0x96   :  { %153 = vst.msk [vmem:[#allocation0 + $0x7] ss:$8 sm:$0xf] %vm22_vm0, %v150_v23   ;;  %155 = vst.msk [vmem:[#allocation0 + $0x7] ss:$8 sm:$0xf0] %vm22_vm0, %v150_v23  }
  0x97   :  { %199 = shalt.err (!%p196_p4)
}
  0x98   :  { %s200_s25 = scalar_lea.hbm %s291_s1, 2048 }
  0x99   :  { %p201_p5 = scmp.ne.s32.totalorder %s291_s1, %s200_s25  ;;  %p204_p6 = scmp.lt.u32.totalorder %s200_s25, %s291_s1 }
  0x9b   :  { %p206_p7 = pnand %p204_p6, %p201_p5 }
  0x9d   :  { %209 = shalt.err (!%p206_p7)
}
  0x9e   :  { %172 = dma.vmem_to_hbm [thread:$0]  %s170_s21, 2048, %s291_s1, [#allocation1]  }
  0x9f   :  { %210 = dma.done.wait [#allocation1], 2048  }
  0xa0   :  { %211 = vsyncadd [#allocation1], 4294965248 }
  0xa1   :  { %174 = vsyncpa [#allocation1], 1 }

// kernel: added_module_forward.1
= control target key start
LH: loop header
LB: loop body
LE: loop exit
PB: predicated region body
PF: predicated region fallthrough
CT: control target
= control target key end

     0   :  { %s1106_s0 = inlined_call_operand.vmem [shape: f32[2,2,6,256], index: 0, kind: input, shape index: {}]   ;;  %s1107_s1 = inlined_call_operand.vmem [shape: f32[2,4,6], index: 1, kind: input, shape index: {}]   ;;  %s1108_s2 = inlined_call_operand.vmem [shape: f32[2,4,1], index: 2, kind: input, shape index: {}]   ;;  %s1109_s3 = inlined_call_operand.vmem [shape: f32[2,6,1], index: 3, kind: input, shape index: {}]   ;;  %s1110_s4 = inlined_call_operand.vmem [shape: f32[2,6,1], index: 4, kind: input, shape index: {}]   ;;  %s1111_s5 = inlined_call_operand.vmem [shape: f32[2,2,4,256], index: 5, kind: output, shape index: {}]  }
   0x1   :  { %1112 = sst [smem:[#allocation8_spill]] %s1106_s0 }
   0x2   :  { %1113 = sst [smem:[#allocation9_spill]] %s1107_s1 }
   0x3   :  { %s986_s18 = smov 0   ;;  %s988_s19 = smov 0  }
   0x4   :  { %s990_s20 = smov 0   ;;  %s992_s21 = smov 0  }
   0x5   :  { %s994_s22 = smov 0   ;;  %s996_s23 = smov 0  }
   0x6   :  { %s998_s24 = smov 0  }
   0x7 LB: > { %s30_s25 = sadd.s32 1, %s942_s22  ;;  %s34_s26 = sadd.s32 1, %s946_s23  ;;  %s950_s24 = sphi %s998_s24, %s15_s24   ;;  %s946_s23 = sphi %s996_s23, %s1121_s23   ;;  %s942_s22 = sphi %s994_s22, %s1120_s22   ;;  %s938_s21 = sphi %s992_s21, %s1119_s21   ;;  %s934_s20 = sphi %s990_s20, %s1118_s20   ;;  %s930_s19 = sphi %s988_s19, %s1117_s19   ;;  %s926_s18 = sphi %s986_s18, %s1116_s18  }
   0x8   : > { %p32_p0 = scmp.ge.s32.totalorder %s30_s25, 2  ;;  %p54_p1 = scmp.ne.s32.totalorder %s930_s19, %s926_s18 }
   0x9   : > { %p55_p2 = scmp.eq.s32.totalorder %s950_s24, 0  ;;  %s47_s28 = sadd.s32 1, %s930_s19 }
   0xa   : > { %s1123_s25 = smov (%p32_p0, %s30_s25), 0  ;;  %s1125_s26 = smov (!%p32_p0, %s34_s26), %s946_s23 }
   0xb   : > { %p56_p3 = por %p55_p2, %p54_p1  ;;  %p36_p4 = scmp.ge.s32.totalorder %s1125_s26, 2 }
   0xc   : > { %p803_p6 = scmp.ge.s32.totalorder %s950_s24, 4 }
   0xd   : > { %s1127_s26 = smov (%p36_p4, %s1125_s26), 0 }
   0xe   : > { %s42_s27 = ssub.s32 %s946_s23, %s1127_s26  ;;  %214 = sbr.rel (%p803_p6) target bundleno = 33 (0x21), region = 16 }
   0xf   : > { %p45_p5 = scmp.eq.s32.totalorder %s42_s27, 0 }
  0x11   : > { %s1035_s29 = scalar_select %p45_p5, %s930_s19, %s47_s28  }
  0x15   : > { %217 = sbr.rel (!%p56_p3) target bundleno = 33 (0x21), region = 20  ;;  %s219_s30 = sand.u32 (%p56_p3), 1, %s930_s19  }
  0x16   : > { %s828_s6 = sshll.u32 (%p56_p3), %s946_s23, 4  ;;  %s804_s7 = sshll.u32 (%p56_p3), %s219_s30, 5 }
  0x17   : > { %s1114_s0 = sld [smem:[#allocation8_spill]] (%p56_p3)  ;;  %s221_s11 = scalar_lea.vmem (%p56_p3), [#allocation7], %s804_s7 }
  0x1d   : > { %s228_s10 = scalar_lea.vmem %s1114_s0, %s828_s6 }
  0x1e   : > { %v241_v0 = vld [vmem:[%s228_s10] sm:$0xff]  ;;  %v243_v1 = vld [vmem:[%s228_s10 + $0x8] sm:$0xff] }
  0x1f   : > { %v245_v2 = vld [vmem:[%s228_s10 + $0x20] sm:$0xff]  ;;  %242 = vst [vmem:[%s221_s11] sm:$0xff] %v241_v0  ;;  %244 = vst [vmem:[%s221_s11 + $0x8] sm:$0xff] %v243_v1  ;;  %v247_v3 = vld [vmem:[%s228_s10 + $0x28] sm:$0xff] }
  0x20   : > { %246 = vst [vmem:[%s221_s11 + $0x10] sm:$0xff] %v245_v2  ;;  %248 = vst [vmem:[%s221_s11 + $0x18] sm:$0xff] %v247_v3 }
  0x21 PF: > { %p807_p7 = scmp.ge.s32.totalorder %s950_s24, 1  ;;  %p281_p8 = scmp.lt.s32.totalorder %s950_s24, 5 }
  0x23   : > { %p282_p9 = pnand %p807_p7, %p281_p8 }
  0x24   : > { %s288_s12 = sand.u32 (!%p282_p9), 1, %s926_s18   ;;  %p339_p10 = scmp.lt.s32.totalorder (!%p282_p9), %s938_s21, 1 }
  0x25   : > { %285 = sbr.rel (%p282_p9) target bundleno = 602 (0x25a), region = 59  ;;  %s808_s13 = sshll.u32 (!%p282_p9), %s288_s12, 5 }
  0x26   : > { %p367_p11 = scmp.eq.s32.totalorder (!%p282_p9), %s934_s20, 0  ;;  %s1115_s1 = sld [smem:[#allocation9_spill]] (!%p282_p9) }
  0x2c   : > { %s1129_s21 = smov (!%p339_p10, %s938_s21), 1  ;;  %372 = sbr.rel (!%p367_p11) target bundleno = 51 (0x33), region = 67 }
  0x2d   : > { %s809_s14 = sshll.u32 %s1129_s21, 2  ;;  %s811_s15 = sshll.u32 %s1129_s21, 3  ;;  %v952_v4 = vmov (%p367_p11), 0.0  }
  0x2e   : > { %s1052_s27 = scalar_lea.vmem %s1115_s1, %s809_s14  ;;  %s1057_s6 = scalar_lea.vmem %s1108_s2, %s809_s14  ;;  %373 = vst [vmem:[#allocation2] sm:$0x3f] (%p367_p11), %v952_v4  ;;  %374 = vst [vmem:[#allocation3] sm:$0x3f] (%p367_p11), %v952_v4 }
  0x2f   : > { %s1062_s18 = scalar_lea.vmem %s1109_s3, %s811_s15  ;;  %s1067_s11 = scalar_lea.vmem %s1110_s4, %s811_s15 }
  0x30   : > { %s829_s12 = sshll.u32 %s1129_s21, 4  ;;  %s290_s1 = scalar_lea.vmem [#allocation7], %s808_s13 }
  0x31   : > { %s1072_s17 = scalar_lea.vmem %s1111_s5, %s829_s12 }
  0x33 PF: > { %p816_p12 = scmp.ne.s32.totalorder %s934_s20, 0 }
  0x34   : > { %v378_v5 = vld [vmem:[%s290_s1] sm:$0x3f] (!%p816_p12)  ;;  %v379_v6 = vld [vmem:[%s290_s1 + $0x8] sm:$0x3f] (!%p816_p12)  ;;  %v380_v7 = vld [vmem:[%s290_s1 + $0x10] sm:$0x3f] (!%p816_p12) }
  0x35   : > { %377 = sbr.rel (%p816_p12) target bundleno = 64 (0x40), region = 71  ;;  %v381_v8 = vld [vmem:[%s290_s1 + $0x18] sm:$0x3f] (!%p816_p12)  ;;  %v382_v9 = vld [vmem:[#allocation2] sm:$0x3f] (!%p816_p12)  ;;  %v385_v11 = vmul.f32 (!%p816_p12), %v378_v5, %v378_v5  ;;  %v388_v12 = vmul.f32 (!%p816_p12), %v379_v6, %v379_v6  ;;  %v391_v15 = vmul.f32 (!%p816_p12), %v380_v7, %v380_v7  ;;  %v953_v16 = vmov (!%p816_p12), 0.0  }
  0x36   : > { %402 = vst [vmem:[#allocation6] sm:$0x3f] (!%p816_p12), %v378_v5  ;;  %403 = vst [vmem:[#allocation6 + $0x8] sm:$0x3f] (!%p816_p12), %v379_v6  ;;  %v383_v10 = vld [vmem:[#allocation3] sm:$0x3f] (!%p816_p12)  ;;  %v384_v13 = vadd.f32 (!%p816_p12), %v382_v9, %v378_v5  ;;  %v394_v19 = vmul.f32 (!%p816_p12), %v381_v8, %v381_v8 }
  0x37   : > { %404 = vst [vmem:[#allocation6 + $0x10] sm:$0x3f] (!%p816_p12), %v380_v7  ;;  %405 = vst [vmem:[#allocation6 + $0x18] sm:$0x3f] (!%p816_p12), %v381_v8  ;;  %v386_v14 = vadd.f32 (!%p816_p12), %v385_v11, %v383_v10 }
  0x38   : > { %406 = vst [vmem:[%s1072_s17] sm:$0xff] (!%p816_p12), %v953_v16  ;;  %407 = vst [vmem:[%s1072_s17 + $0x8] sm:$0xff] (!%p816_p12), %v953_v16  ;;  %v387_v17 = vadd.f32 (!%p816_p12), %v384_v13, %v379_v6 }
  0x39   : > { %v389_v18 = vadd.f32 (!%p816_p12), %v388_v12, %v386_v14 }
  0x3a   : > { %v390_v20 = vadd.f32 (!%p816_p12), %v387_v17, %v380_v7 }
  0x3b   : > { %v392_v21 = vadd.f32 (!%p816_p12), %v391_v15, %v389_v18 }
  0x3c   : > { %v393_v22 = vadd.f32 %v390_v20, %v381_v8 }
  0x3d   : > { %v395_v23 = vadd.f32 %v394_v19, %v392_v21 }
  0x3e   : > { %396 = vst [vmem:[#allocation2] sm:$0x3f] %v393_v22 }
  0x3f   : > { %397 = vst [vmem:[#allocation3] sm:$0x3f] %v395_v23 }
  0x40 PF: > { %p408_p13 = scmp.eq.s32.totalorder %s934_s20, 1 }
  0x41   : > { %vm414_vm0 = vcmask (%p408_p13), 1045504   ;;  %v427_v36 = vld [vmem:[%s1062_s18] sm:$0x3f] (%p408_p13)  ;;  %vm431_vm1 = vcmask (%p408_p13), 5120  }
  0x42   : > { %412 = sbr.rel (!%p408_p13) target bundleno = 243 (0xf3), region = 75  ;;  %v433_v39 = vld [vmem:[%s1067_s11] sm:$0x3f] (%p408_p13) }
  0x45   : > { %v413_v24 = vld [vmem:[#allocation2] sm:$0x3f] (%p408_p13) }
  0x46   : > { %v419_v25 = vld [vmem:[#allocation3] sm:$0x3f] (%p408_p13)  ;;  %v415_v26 = vsel (%p408_p13), %vm414_vm0, %v413_v24, 0.0 }
  0x47   : > { %416 = vadd.xlane.f32.xlu0 (%p408_p13), %v415_v26  ;;  %v420_v27 = vsel (%p408_p13), %vm414_vm0, %v419_v25, 0.0 }
  0x4b   : > { %421 = vadd.xlane.f32.xlu0 %v420_v27 }
  0xd4   : > { %v417_v28 = vpop.xlane.xlu0 %416 }
  0xd5   : > { %v418_v29 = vmul.f32 0.001953125, %v417_v28 }
  0xd7   : > { %v424_v31 = vmul.f32 %v418_v29, %v418_v29 }
  0xd8   : > { %v422_v30 = vpop.xlane.xlu0 %421 }
  0xd9   : > { %v423_v32 = vmul.f32 0.001953125, %v422_v30 }
  0xdb   : > { %v425_v33 = vsub.f32 %v423_v32, %v424_v31 }
  0xdd   : > { %v426_v34 = vmax.f32 %v425_v33, 0.0 }
  0xdf   : > { %v428_v35 = vadd.f32 1e-05, %v426_v34 }
  0xe1   : > { %892 = vrsqrt.f32 %v428_v35 }
  0xeb   : > { %v893_v37 = vpop.eup %892 }
  0xec   : > { %v430_v38 = vmul.f32 %v893_v37, %v427_v36 }
  0xee   : > { %432 = vst.msk [vmem:[#allocation4] sm:$0x3f] %vm431_vm1, %v430_v38  ;;  %v434_v40 = vmul.f32 %v430_v38, %v418_v29 }
  0xf0   : > { %v435_v41 = vsub.f32 %v433_v39, %v434_v40 }
  0xf2   : > { %436 = vst.msk [vmem:[#allocation5] sm:$0x3f] %vm431_vm1, %v435_v41 }
  0xf3 PF: > { %p818_p0 = scmp.ne.s32.totalorder %s934_s20, 1 }
  0xf4   : > { %v954_v43 = vmov (!%p818_p0), 0   ;;  %v955_v45 = vmov (!%p818_p0), 0.0   ;;  %v451_v46 = vld [vmem:[%s1057_s6] sm:$0xf] (!%p818_p0)  ;;  %v446_v49 = vld [vmem:[#allocation6 + $0x10] sm:$0x3f] (!%p818_p0) }
  0xf5   : > { %439 = sbr.rel (%p818_p0) target bundleno = 602 (0x25a), region = 79  ;;  %v448_v42 = vld [vmem:[#allocation4] sm:$0x3f] (!%p818_p0)  ;;  %894 = vset.pattern.permute.xlu0 (!%p818_p0), %v954_v43  ;;  %895 = vset.pattern.permute.xlu1 (!%p818_p0), %v954_v43  ;;  %v444_v47 = vld [vmem:[#allocation6] sm:$0x3f] (!%p818_p0)  ;;  %vm477_vm2 = vcmask (!%p818_p0), 1045504  }
  0xf6   : > { %454 = vperm.xlu0 (!%p818_p0), %894, %v448_v42   ;;  %548 = vmatprep.mubr.f32.mxu0 (!%p818_p0), %v955_v45  ;;  %v445_v50 = vld [vmem:[#allocation6 + $0x8] sm:$0x3f] (!%p818_p0)  ;;  %v447_v51 = vld [vmem:[#allocation6 + $0x18] sm:$0x3f] (!%p818_p0)  ;;  %v450_v1 = vld [vmem:[%s1052_s27] sm:$0xf] (!%p818_p0) }
  0xf7   : > { %636 = vmatprep.mubr.f32.mxu1 (!%p818_p0), %v955_v45  ;;  %470 = vperm.xlu1 (!%p818_p0), %895, %v451_v46   ;;  %vm473_vm3 = vcmask (!%p818_p0), 48128  }
  0xf9   : > { %v449_v44 = vld [vmem:[#allocation5] sm:$0x3f] (!%p818_p0) }
  0xfa   : > { %461 = vperm.xlu0 (!%p818_p0), %894, %v449_v44  }
 0x175   : > { %v455_v48 = vpop.permute.xlu0 %454 }
 0x176   : > { %v457_v52 = vmul.f32 %v455_v48, %v444_v47  ;;  %v560_v53 = vmul.f32 %v455_v48, %v446_v49  ;;  %v458_v54 = vmul.f32 %v455_v48, %v445_v50  ;;  %v561_v55 = vmul.f32 %v455_v48, %v447_v51  ;;  %v471_v2 = vpop.permute.xlu1 %470 }
 0x179   : > { %v462_v56 = vpop.permute.xlu0 %461 }
 0x17a   : > { %v464_v57 = vadd.f32 %v462_v56, %v457_v52  ;;  %v562_v58 = vadd.f32 %v560_v53, %v462_v56  ;;  %v465_v59 = vadd.f32 %v462_v56, %v458_v54  ;;  %v563_v60 = vadd.f32 %v561_v55, %v462_v56 }
 0x17c   : > { %v467_v61 = vmax.f32 %v465_v59, 0.0  ;;  %v565_v62 = vmax.f32 %v563_v60, 0.0  ;;  %v466_v63 = vmax.f32 %v464_v57, 0.0  ;;  %v564_v0 = vmax.f32 %v562_v58, 0.0 }
 0x17e   : > { %819 = vmatprep.subr.msk.mxu0 %vm477_vm2, %v467_v61  ;;  %822 = vmatprep.subr.msk.mxu1 %vm477_vm2, %v565_v62 }
 0x17f   : > { %820 = vmatpush1.msk.msra.mxu0 %vm477_vm2, %v466_v63  ;;  %823 = vmatpush1.msk.msra.mxu1 %vm477_vm2, %v564_v0 }
 0x180   : > { %821 = vmatmul.mubr.msk.f32.vlgmr.msra.gmra.mrb[0].mxu0 %vm473_vm3, %v450_v1  ;;  %824 = vmatmul.mubr.msk.f32.vlgmr.msra.gmra.mrb[0].mxu1 %vm473_vm3, %v450_v1 }
 0x253   : > { %v550_v3 = vpop.f32.mrb[0].mxu0  ;;  %v638_v4 = vpop.f32.mrb[0].mxu1 }
 0x254   : > { %v551_v5 = vadd.f32 %v550_v3, %v471_v2  ;;  %v639_v6 = vadd.f32 %v638_v4, %v471_v2  ;;  %v552_v7 = vpop.f32.mrb[1].mxu0  ;;  %v640_v8 = vpop.f32.mrb[1].mxu1 }
 0x255   : > { %v553_v9 = vadd.f32 %v552_v7, %v471_v2  ;;  %v641_v10 = vadd.f32 %v640_v8, %v471_v2 }
 0x257   : > { %v557_v11 = vcombine.low %v551_v5, %v553_v9  ;;  %v645_v12 = vcombine.low %v639_v6, %v641_v10 }
 0x259   : > { %559 = vst [vmem:[%s1072_s17] sm:$0xff] %v557_v11  ;;  %825 = vst [vmem:[%s1072_s17 + $0x8] sm:$0xff] %v645_v12 }
 0x25a PF: > { %s15_s24 = sadd.s32 1, %s950_s24   ;;  %s1116_s18 = smov %s930_s19 }
 0x25b   : > { %p12_p1 = scmp.ge.s32.totalorder %s15_s24, 6   ;;  %s1117_s19 = smov %s1035_s29 }
 0x25c   : > { %s1118_s20 = smov %s942_s22  ;;  %s1119_s21 = smov %s946_s23 }
 0x25d   : > { %s1120_s22 = smov %s1123_s25  ;;  %s1121_s23 = smov %s1127_s26 }
 0x25e   :  { %14 = sbr.rel (!%p12_p1) target bundleno = 7 (0x7), region = 129 }

</bundles_post_ra>
